<compile_context>
chip_gen: v6e
topology: v6e:2x2x1
jax: 0.10.0
libtpu: 0.0.40
codegen_flags: <defaults>
</compile_context>

<pallas_src>
import jax
import jax.numpy as jnp
from jax import lax
from jax.experimental import pallas as pl
from jax.experimental.pallas import tpu as pltpu


def _mlp_kernel(x_ref, w1_ref, b1_ref, w2_ref, b2_ref, o_ref):
    # x_ref : (TILE_B, 10) bf16   natural layout (batch on sublanes), no wrapper transpose
    # w1_ref: (50, 10)     bf16   PyTorch layout (out, in), resident
    # b1_ref: (50, 1)      f32    resident
    # w2_ref: (50, 1)      f32    fc2 weight as a column (consumed on the VPU), resident
    # b2_ref: (1, 1)       f32    scalar in SMEM
    # o_ref : (1, TILE_B)  f32    lane-dense output block (batch on lanes)

    # fc1 on the MXU: contract the feature axis of BOTH operands (W1 standard, x as a
    # transposed rhs) -> (50, TILE_B).  bf16 operands, f32 accumulation.
    h = lax.dot_general(
        w1_ref[...], x_ref[...],
        dimension_numbers=(((1,), (1,)), ((), ())),
        preferred_element_type=jnp.float32,
    )
    h = jnp.maximum(h + b1_ref[...], 0.0)                      # bias + ReLU (VPU, f32)

    # fc2 on the VPU/XLU: broadcast-multiply + sublane reduce keeps the MXU free.
    out = jnp.sum(w2_ref[...] * h, axis=0, keepdims=True)      # (1, TILE_B)
    o_ref[...] = (out + b2_ref[0, 0]).astype(o_ref.dtype)      # scalar bias from SMEM


def _pick_tile(batch, tile_b):
    """Lane-aligned batch tile: big enough to amortize grid-step overhead, small enough
    for v5e VMEM, and yielding >=2 grid steps (v7x megacore) whenever batch >= 256."""
    tile_b = max(128, min(tile_b, 32768))                      # v5e-safe upper bound
    b128 = max(128, ((batch + 127) // 128) * 128)              # lane-align the batch
    if b128 <= 128:
        return 128
    half = ((b128 // 2) + 127) // 128 * 128                    # >=2 steps if possible
    return max(128, min(tile_b, half))


def simple_model_forward(x, w1, b1, w2, b2, *, tile_b=16384):
    """x: (B, 10) f32, PyTorch-layout params:
       w1 (50,10), b1 (50,), w2 (1,50), b2 (1,)  ->  (B, 1) f32."""
    B, fin = x.shape
    fh = w1.shape[0]

    tile = _pick_tile(B, tile_b)
    n_tiles = pl.cdiv(B, tile)
    b_pad = n_tiles * tile

    # Natural-layout x, cast to bf16 for the MXU.  Only a ragged batch tail gets padded
    # (no transpose, no extra HBM round-trip in the common aligned case).
    x_bf = x.astype(jnp.bfloat16)
    if b_pad != B:
        x_bf = jnp.pad(x_bf, ((0, b_pad - B), (0, 0)))

    w1_bf = w1.astype(jnp.bfloat16)
    b1_col = b1.reshape(fh, 1).astype(jnp.float32)
    w2_col = w2.reshape(fh, 1).astype(jnp.float32)             # (1,50) -> (50,1) column
    b2_s = b2.reshape(1, 1).astype(jnp.float32)

    out_t = pl.pallas_call(
        _mlp_kernel,
        out_shape=jax.ShapeDtypeStruct((1, b_pad), jnp.float32),
        grid=(n_tiles,),
        in_specs=[
            pl.BlockSpec((tile, fin), lambda i: (i, 0)),                       # x tile
            pl.BlockSpec((fh, fin), lambda i: (0, 0)),                         # W1 resident
            pl.BlockSpec((fh, 1), lambda i: (0, 0)),                           # b1 resident
            pl.BlockSpec((fh, 1), lambda i: (0, 0)),                           # w2 resident
            pl.BlockSpec((1, 1), lambda i: (0, 0), memory_space=pltpu.SMEM),   # b2 scalar
        ],
        out_specs=pl.BlockSpec((1, tile), lambda i: (0, i)),                   # lane-dense
        compiler_params=pltpu.CompilerParams(
            dimension_semantics=("parallel",),
            vmem_limit_bytes=32 * 1024 * 1024,
        ),
    )(x_bf, w1_bf, b1_col, w2_col, b2_s)

    return out_t[0, :B].reshape(B, 1)


def init_params(key):
    """Deterministic PyTorch-style uniform(-1/sqrt(fan_in), 1/sqrt(fan_in)) init.
       Stored in PyTorch layout: w (out_features, in_features), b (out_features,)."""
    k1, k2, k3, k4 = jax.random.split(key, 4)
    bound1 = 1.0 / jnp.sqrt(10.0)
    bound2 = 1.0 / jnp.sqrt(50.0)
    w1 = jax.random.uniform(k1, (50, 10), jnp.float32, -bound1, bound1)
    b1 = jax.random.uniform(k2, (50,), jnp.float32, -bound1, bound1)
    w2 = jax.random.uniform(k3, (1, 50), jnp.float32, -bound2, bound2)
    b2 = jax.random.uniform(k4, (1,), jnp.float32, -bound2, bound2)
    return w1, b1, w2, b2


if __name__ == "__main__":
    key = jax.random.PRNGKey(0)
    k_params, k_x = jax.random.split(key)

    w1, b1, w2, b2 = init_params(k_params)
    x = jax.random.normal(k_x, (8, 10), jnp.float32)  # batch=8, in_features=10

    out = simple_model_forward(x, w1, b1, w2, b2)
    out = jax.block_until_ready(out)

    # Reference in plain JAX (same math as the PyTorch forward: x @ W.T + b).
    ref = jnp.maximum(x @ w1.T + b1, 0.0) @ w2.T + b2
    assert out.shape == (8, 1)
    # bf16 MXU operands over a 10-/50-wide contraction -> slightly looser tolerance.
    assert jnp.allclose(out, ref, atol=2e-2, rtol=2e-2), float(jnp.max(jnp.abs(out - ref)))

    print("KERNEL_OK")
</pallas_src>

<mosaic_0001>
module attributes {stable_mosaic.version = 11 : i64} {
  func.func @_mlp_kernel(%arg0: i32, %arg1: memref<128x10xbf16, #tpu.memory_space<vmem>>, %arg2: memref<50x10xbf16, #tpu.memory_space<vmem>>, %arg3: memref<50x1xf32, #tpu.memory_space<vmem>>, %arg4: memref<50x1xf32, #tpu.memory_space<vmem>>, %arg5: memref<1x1xf32, #tpu.memory_space<smem>>, %arg6: memref<1x128xf32, #tpu.memory_space<vmem>>) attributes {dimension_semantics = [#tpu.dimension_semantics<parallel>], iteration_bounds = array<i64: 1>, scalar_prefetch = 0 : i64, scratch_operands = 0 : i64, tpu.core_type = #tpu.core_type<tc>, window_params = [{transform_indices = @transform_0, window_bounds = array<i64: 128, 10>}, {pipeline_mode = #tpu.pipeline_mode<synchronous>, transform_indices = @transform_1, window_bounds = array<i64: 50, 10>}, {pipeline_mode = #tpu.pipeline_mode<synchronous>, transform_indices = @transform_2, window_bounds = array<i64: 50, 1>}, {pipeline_mode = #tpu.pipeline_mode<synchronous>, transform_indices = @transform_3, window_bounds = array<i64: 50, 1>}, {transform_indices = @transform_4, window_bounds = array<i64: 1, 1>}, {transform_indices = @transform_5, window_bounds = array<i64: 1, 128>}]} {
    %c0 = arith.constant 0 : index
    %c0_0 = arith.constant 0 : index
    %0 = vector.load %arg2[%c0, %c0_0] : memref<50x10xbf16, #tpu.memory_space<vmem>>, vector<50x10xbf16>
    %c0_1 = arith.constant 0 : index
    %c0_2 = arith.constant 0 : index
    %1 = vector.load %arg1[%c0_1, %c0_2] : memref<128x10xbf16, #tpu.memory_space<vmem>>, vector<128x10xbf16>
    %cst = arith.constant dense<0.000000e+00> : vector<50x128xf32>
    %2 = tpu.matmul %0, %1, %cst {dimension_numbers = #tpu.dot_dimension_numbers<[1], [1], [0], [0], [0, 0, 1, 0], [], []>} : vector<50x10xbf16>, vector<128x10xbf16>, vector<50x128xf32> -> vector<50x128xf32>
    %c0_3 = arith.constant 0 : index
    %c0_4 = arith.constant 0 : index
    %3 = vector.load %arg3[%c0_3, %c0_4] : memref<50x1xf32, #tpu.memory_space<vmem>>, vector<50x1xf32>
    %4 = vector.broadcast %3 : vector<50x1xf32> to vector<50x128xf32>
    %5 = arith.addf %2, %4 : vector<50x128xf32>
    %cst_5 = arith.constant 0.000000e+00 : f32
    %6 = vector.broadcast %cst_5 : f32 to vector<50x128xf32>
    %7 = arith.maximumf %5, %6 : vector<50x128xf32>
    %c0_6 = arith.constant 0 : index
    %c0_7 = arith.constant 0 : index
    %8 = vector.load %arg4[%c0_6, %c0_7] : memref<50x1xf32, #tpu.memory_space<vmem>>, vector<50x1xf32>
    %9 = vector.broadcast %8 : vector<50x1xf32> to vector<50x128xf32>
    %10 = arith.mulf %9, %7 : vector<50x128xf32>
    %cst_8 = arith.constant dense<0.000000e+00> : vector<128xf32>
    %11 = vector.multi_reduction <add>, %10, %cst_8 [0] : vector<50x128xf32> to vector<128xf32>
    %12 = vector.shape_cast %11 : vector<128xf32> to vector<1x128xf32>
    %c0_9 = arith.constant 0 : index
    %c0_10 = arith.constant 0 : index
    %13 = memref.load %arg5[%c0_9, %c0_10] : memref<1x1xf32, #tpu.memory_space<smem>>
    %14 = vector.broadcast %13 : f32 to vector<1x128xf32>
    %15 = arith.addf %12, %14 : vector<1x128xf32>
    %c0_11 = arith.constant 0 : index
    %c0_12 = arith.constant 0 : index
    %16 = vector.load %arg6[%c0_11, %c0_12] : memref<1x128xf32, #tpu.memory_space<vmem>>, vector<1x128xf32>
    tpu.vector_store %arg6[%c0_11, %c0_12], %15 {strides = array<i32>} : memref<1x128xf32, #tpu.memory_space<vmem>>, vector<1x128xf32>,
    return
  }
  func.func @transform_0(%arg0: i32) -> (i32, i32) {
    %c0_i32 = arith.constant 0 : i32
    %c0_i32_0 = arith.constant 0 : i32
    return %arg0, %c0_i32 : i32, i32
  }
  func.func @transform_1(%arg0: i32) -> (i32, i32) {
    %c0_i32 = arith.constant 0 : i32
    %c0_i32_0 = arith.constant 0 : i32
    %c0_i32_1 = arith.constant 0 : i32
    return %c0_i32, %c0_i32_0 : i32, i32
  }
  func.func @transform_2(%arg0: i32) -> (i32, i32) {
    %c0_i32 = arith.constant 0 : i32
    %c0_i32_0 = arith.constant 0 : i32
    %c0_i32_1 = arith.constant 0 : i32
    return %c0_i32, %c0_i32_0 : i32, i32
  }
  func.func @transform_3(%arg0: i32) -> (i32, i32) {
    %c0_i32 = arith.constant 0 : i32
    %c0_i32_0 = arith.constant 0 : i32
    %c0_i32_1 = arith.constant 0 : i32
    return %c0_i32, %c0_i32_0 : i32, i32
  }
  func.func @transform_4(%arg0: i32) -> (i32, i32) {
    %c0_i32 = arith.constant 0 : i32
    %c0_i32_0 = arith.constant 0 : i32
    %c0_i32_1 = arith.constant 0 : i32
    return %c0_i32, %c0_i32_0 : i32, i32
  }
  func.func @transform_5(%arg0: i32) -> (i32, i32) {
    %c0_i32 = arith.constant 0 : i32
    %c0_i32_0 = arith.constant 0 : i32
    return %c0_i32, %arg0 : i32, i32
  }
}

</mosaic_0001>

<bundles_post_ra>
// kernel: tpu_custom_call.1
= control target key start
LH: loop header
LB: loop body
LE: loop exit
PB: predicated region body
PF: predicated region fallthrough
CT: control target
= control target key end

     0   :  { %vm146_vm0 = vcmask 80896   ;;  %v457_v3 = vmov 0   ;;  %s601_s0 = inlined_call_operand.vmem [shape: bf16[128,10], index: 0, kind: input, shape index: {}]   ;;  %s602_s1 = inlined_call_operand.vmem [shape: bf16[50,10], index: 1, kind: input, shape index: {}]   ;;  %s603_s2 = inlined_call_operand.vmem [shape: f32[50,1], index: 2, kind: input, shape index: {}]   ;;  %s604_s3 = inlined_call_operand.vmem [shape: f32[50,1], index: 3, kind: input, shape index: {}]   ;;  %s605_s4 = inlined_call_operand.<no memory space> [shape: f32[1,1], index: 4, kind: input, shape index: {}]   ;;  %s606_s5 = inlined_call_operand.hbm [shape: f32[1,128], index: 5, kind: output, shape index: {}]  }
   0x1   :  { %v423_v0 = vld [vmem:[%s601_s0 + $0x38] sm:$0xff]   ;;  %v424_v1 = vld [vmem:[%s601_s0 + $0x30] sm:$0xff]   ;;  %421 = vset.pattern.permute.xlu0 %v457_v3  ;;  %422 = vset.pattern.permute.xlu1 %v457_v3  ;;  %v425_v4 = vld [vmem:[%s601_s0 + $0x28] sm:$0xff]  }
   0x2   :  { %403 = vmatprep.subr.msk.bf16.mxu0 %vm146_vm0, %v423_v0  ;;  %404 = vmatprep.subr.msk.bf16.mxu1 %vm146_vm0, %v423_v0  ;;  %v181_v2 = vsel %vm146_vm0, %v423_v0, 0  ;;  %v178_v5 = vsel %vm146_vm0, %v424_v1, 0  ;;  %v431_v6 = vld [vmem:[%s602_s1] sm:$0xff]   ;;  %v432_v7 = vld [vmem:[%s602_s1 + $0x10] sm:$0xff]   ;;  %v47_v10 = vld [vmem:[%s603_s2 + $0x8] sm:$0xff]  ;;  %v175_v12 = vsel %vm146_vm0, %v425_v4, 0 }
   0x3   :  { %364 = vmatpush3.bf16.xpose.msra.mxu0 %v181_v2  ;;  %395 = vmatpush3.bf16.xpose.msra.mxu1 %v181_v2  ;;  %v46_v8 = vld [vmem:[%s603_s2] sm:$0xff]  ;;  %v48_v9 = vld [vmem:[%s603_s2 + $0x10] sm:$0xff]  ;;  %v49_v11 = vld [vmem:[%s603_s2 + $0x18] sm:$0xff] }
   0x4   :  { %405 = vmatprep.subr.msk.bf16.mxu0 %vm146_vm0, %v424_v1  ;;  %406 = vmatprep.subr.msk.bf16.mxu1 %vm146_vm0, %v424_v1  ;;  %v426_v13 = vld [vmem:[%s601_s0 + $0x20] sm:$0xff]  }
   0x5   :  { %379 = vmatprep.mubr.msk.bf16.mxu0 %vm146_vm0, %v431_v6  ;;  %383 = vmatprep.mubr.msk.bf16.mxu1 %vm146_vm0, %v432_v7 }
   0x6   :  { %55 = vperm.xlu0 %421, %v46_v8   ;;  %65 = vperm.xlu1 %422, %v48_v9  }
   0xb   :  { %366 = vmatpush3.bf16.xpose.msra.mxu0 %v178_v5  ;;  %396 = vmatpush3.bf16.xpose.msra.mxu1 %v178_v5 }
   0xc   :  { %407 = vmatprep.subr.msk.bf16.mxu0 %vm146_vm0, %v425_v4  ;;  %408 = vmatprep.subr.msk.bf16.mxu1 %vm146_vm0, %v425_v4 }
   0xd   :  { %11 = vsyncpa [#allocation4], 0  ;;  %60 = vperm.xlu0 %421, %v47_v10   ;;  %70 = vperm.xlu1 %422, %v49_v11   ;;  %v254_v14 = vld [vmem:[%s604_s3] sm:$0xff]  ;;  %v255_v15 = vld [vmem:[%s604_s3 + $0x8] sm:$0xff]  ;;  %v172_v18 = vsel %vm146_vm0, %v426_v13, 0  ;;  %vm308_vm1 = vcmask 1041408  }
   0xe   :  { %v50_v16 = vld [vmem:[%s603_s2 + $0x20] sm:$0xff]  ;;  %v256_v17 = vld [vmem:[%s604_s3 + $0x10] sm:$0xff]  ;;  %v427_v19 = vld [vmem:[%s601_s0 + $0x18] sm:$0xff]   ;;  %s458_s18 = smov [#allocation3]  }
   0xf   :  { %v51_v20 = vld [vmem:[%s603_s2 + $0x28] sm:$0xff]  ;;  %v257_v21 = vld [vmem:[%s604_s3 + $0x18] sm:$0xff]  ;;  %v52_v22 = vld [vmem:[%s603_s2 + $0x30] sm:$0x3]  ;;  %v169_v24 = vsel %vm146_vm0, %v427_v19, 0  ;;  %s327_s19 = sshll.u32 %s458_s18, 4  ;;  %s328_s19 = int_to_ptr.vmem [resolvable:$true] %s327_s19 }
  0x10   :  { %v258_v23 = vld [vmem:[%s604_s3 + $0x20] sm:$0xff]  ;;  %v428_v25 = vld [vmem:[%s601_s0 + $0x10] sm:$0xff]   ;;  %v259_v26 = vld [vmem:[%s604_s3 + $0x28] sm:$0xff]  ;;  %s435_s20 = scalar_lea.vmem %s328_s19, 16  ;;  %s439_s21 = scalar_lea.vmem %s328_s19, 32 }
  0x11   :  { %263 = vperm.xlu0 %421, %v254_v14   ;;  %268 = vperm.xlu1 %422, %v255_v15   ;;  %v260_v27 = vld [vmem:[%s604_s3 + $0x30] sm:$0x3]  ;;  %v166_v28 = vsel %vm146_vm0, %v428_v25, 0  ;;  %v429_v29 = vld [vmem:[%s601_s0 + $0x8] sm:$0xff]   ;;  %v430_v31 = vld [vmem:[%s601_s0] sm:$0xff]   ;;  %p436_p0 = scmp.ne.s32.totalorder %s328_s19, %s435_s20  ;;  %p440_p1 = scmp.lt.s32.totalorder %s328_s19, %s328_s19 }
  0x12   :  { %v163_v30 = vsel %vm146_vm0, %v429_v29, 0  ;;  %v160_v32 = vsel %vm146_vm0, %v430_v31, 0  ;;  %v433_v33 = vld [vmem:[%s602_s1 + $0x8] sm:$0xff]   ;;  %v434_v34 = vld [vmem:[%s602_s1 + $0x18] ss:$0 sps:$4 sm:$0x11]   ;;  %p441_p2 = scmp.lt.s32.totalorder %s439_s21, %s435_s20 }
  0x13   :  { %368 = vmatpush3.bf16.xpose.msra.mxu0 %v175_v12  ;;  %397 = vmatpush3.bf16.xpose.msra.mxu1 %v175_v12 }
  0x14   :  { %409 = vmatprep.subr.msk.bf16.mxu0 %vm146_vm0, %v426_v13  ;;  %410 = vmatprep.subr.msk.bf16.mxu1 %vm146_vm0, %v426_v13  ;;  %p442_p3 = por %p441_p2, %p440_p1 }
  0x15   :  { %75 = vperm.xlu0 %421, %v50_v16   ;;  %273 = vperm.xlu1 %422, %v256_v17  }
  0x16   :  { %p443_p4 = pnand %p442_p3, %p436_p0 }
  0x19   :  { %80 = vperm.xlu0 %421, %v51_v20   ;;  %278 = vperm.xlu1 %422, %v257_v21  }
  0x1b   :  { %370 = vmatpush3.bf16.xpose.msra.mxu0 %v172_v18  ;;  %398 = vmatpush3.bf16.xpose.msra.mxu1 %v172_v18 }
  0x1c   :  { %411 = vmatprep.subr.msk.bf16.mxu0 %vm146_vm0, %v427_v19  ;;  %412 = vmatprep.subr.msk.bf16.mxu1 %vm146_vm0, %v427_v19 }
  0x1d   :  { %85 = vperm.xlu0 %421, %v52_v22   ;;  %283 = vperm.xlu1 %422, %v258_v23  }
  0x21   :  { %288 = vperm.xlu0 %421, %v259_v26   ;;  %293 = vperm.xlu1 %422, %v260_v27   ;;  %v318_v26 = vstv %s605_s4 }
  0x23   :  { %372 = vmatpush3.bf16.xpose.msra.mxu0 %v169_v24  ;;  %399 = vmatpush3.bf16.xpose.msra.mxu1 %v169_v24 }
  0x24   :  { %413 = vmatprep.subr.msk.bf16.mxu0 %vm146_vm0, %v428_v25  ;;  %414 = vmatprep.subr.msk.bf16.mxu1 %vm146_vm0, %v428_v25 }
  0x2b   :  { %374 = vmatpush3.bf16.xpose.msra.mxu0 %v166_v28  ;;  %400 = vmatpush3.bf16.xpose.msra.mxu1 %v166_v28 }
  0x2c   :  { %415 = vmatprep.subr.msk.bf16.mxu0 %vm146_vm0, %v429_v29  ;;  %416 = vmatprep.subr.msk.bf16.mxu1 %vm146_vm0, %v429_v29 }
  0x33   :  { %376 = vmatpush3.bf16.xpose.msra.mxu0 %v163_v30  ;;  %401 = vmatpush3.bf16.xpose.msra.mxu1 %v163_v30 }
  0x34   :  { %417 = vmatprep.subr.msk.bf16.mxu0 %vm146_vm0, %v430_v31  ;;  %418 = vmatprep.subr.msk.bf16.mxu1 %vm146_vm0, %v430_v31 }
  0x3b   :  { %378 = vmatpush3.bf16.xpose.msra.mxu0 %v160_v32  ;;  %402 = vmatpush3.bf16.xpose.msra.mxu1 %v160_v32 }
  0x42   :  { %380 = vmatmul.mubr.msk.bf16.vlgmr.msra.gmra.mxu0 %vm146_vm0, %v433_v33  ;;  %384 = vmatmul.mubr.msk.bf16.vlgmr.msra.gmra.mxu1 %vm146_vm0, %v434_v34 }
  0x81   :  { %v56_v35 = vpop.permute.xlu0 %55  ;;  %v66_v36 = vpop.permute.xlu1 %65 }
  0x88   :  { %v61_v37 = vpop.permute.xlu0 %60  ;;  %v71_v38 = vpop.permute.xlu1 %70 }
  0x8c   :  { %v264_v39 = vpop.permute.xlu0 %263  ;;  %v269_v40 = vpop.permute.xlu1 %268 }
  0x90   :  { %v76_v41 = vpop.permute.xlu0 %75  ;;  %v274_v42 = vpop.permute.xlu1 %273 }
  0x94   :  { %v81_v47 = vpop.permute.xlu0 %80  ;;  %v279_v51 = vpop.permute.xlu1 %278 }
  0x98   :  { %v86_v58 = vpop.permute.xlu0 %85  ;;  %v284_v63 = vpop.permute.xlu1 %283 }
  0x9c   :  { %v294_v11 = vpop.permute.xlu1 %293  ;;  %v289_v14 = vpop.permute.xlu0 %288 }
 0x102   :  { %v381_v43 = vpop.f32.mrf.mxu0  ;;  %v385_v44 = vpop.f32.mrf.mxu1 }
 0x103   :  { %v226_v52 = vadd.f32 %v381_v43, %v66_v36  ;;  %v242_v62 = vadd.f32 %v385_v44, %v86_v58 }
 0x104   :  { %v217_v45 = vpop.f32.mrf.mxu0  ;;  %v233_v46 = vpop.f32.mrf.mxu1 }
 0x105   :  { %v218_v48 = vadd.f32 %v217_v45, %v56_v35  ;;  %v249_v59 = vmax.f32 %v226_v52, 0.0  ;;  %v234_v60 = vadd.f32 %v233_v46, %v76_v41  ;;  %v253_v7 = vmax.f32 %v242_v62, 0.0 }
 0x106   :  { %v382_v49 = vpop.f32.mrf.mxu0  ;;  %v386_v50 = vpop.f32.mrf.mxu1 }
 0x107   :  { %v247_v54 = vmax.f32 %v218_v48, 0.0  ;;  %v229_v55 = vadd.f32 %v382_v49, %v71_v38  ;;  %v298_v4 = vmul.f32 %v274_v42, %v249_v59  ;;  %v251_v5 = vmax.f32 %v234_v60, 0.0 }
 0x108   :  { %v220_v53 = vpop.f32.mrf.mxu0  ;;  %v236_v57 = vpop.f32.mrf.mxu1  ;;  %v302_v15 = vmul.f32 %v294_v11, %v253_v7 }
 0x109   :  { %v221_v56 = vadd.f32 %v220_v53, %v61_v37  ;;  %v296_v0 = vmul.f32 %v264_v39, %v247_v54  ;;  %v250_v1 = vmax.f32 %v229_v55, 0.0  ;;  %v237_v3 = vadd.f32 %v236_v57, %v81_v47 }
 0x10a   :  { %v300_v12 = vmul.f32 %v284_v63, %v251_v5  ;;  %v309_v19 = vsel %vm308_vm1, %v302_v15, 0.0 }
 0x10b   :  { %v248_v61 = vmax.f32 %v221_v56, 0.0  ;;  %v299_v8 = vmul.f32 %v279_v51, %v250_v1  ;;  %v252_v10 = vmax.f32 %v237_v3, 0.0 }
 0x10d   :  { %v297_v2 = vmul.f32 %v269_v40, %v248_v61  ;;  %v301_v16 = vmul.f32 %v289_v14, %v252_v10 }
 0x10f   :  { %v303_v6 = vadd.f32 %v297_v2, %v296_v0 }
 0x111   :  { %v304_v9 = vadd.f32 %v303_v6, %v298_v4 }
 0x113   :  { %v305_v13 = vadd.f32 %v304_v9, %v299_v8 }
 0x115   :  { %v306_v17 = vadd.f32 %v305_v13, %v300_v12 }
 0x117   :  { %v307_v18 = vadd.f32 %v306_v17, %v301_v16 }
 0x119   :  { %v310_v20 = vadd.f32 %v309_v19, %v307_v18 }
 0x11b   :  { %v311_v21 = vrot.slane %v310_v20, 4 }
 0x11d   :  { %v312_v22 = vadd.f32 %v311_v21, %v310_v20 }
 0x11f   :  { %v313_v23 = vrot.slane %v312_v22, 2 }
 0x121   :  { %v314_v24 = vadd.f32 %v313_v23, %v312_v22 }
 0x123   :  { %v315_v25 = vrot.slane %v314_v24, 1 }
 0x125   :  { %v316_v27 = vadd.f32 %v315_v25, %v314_v24 }
 0x127   :  { %v319_v28 = vadd.f32 %v318_v26, %v316_v27 }
 0x129   :  { %320 = vst [vmem:[#allocation3] sm:$0x1] %v319_v28 }
 0x12a   :  { %446 = shalt.err (!%p443_p4)
}
 0x12b   :  { %330 = dma.vmem_to_hbm [thread:$0]  %s328_s19, 16, %s606_s5, [#allocation4]  }
 0x12c   :  { %455 = dma.done.wait [#allocation4], 16  }
 0x12d   :  { %456 = vsyncadd [#allocation4], 4294967280 }
 0x12e   :  { %334 = vsyncpa [#allocation4], 1 }

</bundles_post_ra>
